<compile_context>
chip_gen: v5e
topology: v5e:2x2
jax: 0.10.0
libtpu: 0.0.40
codegen_flags: <defaults>
</compile_context>

<pallas_src>
import jax
import jax.numpy as jnp
from jax.experimental import pallas as pl
from jax.experimental.pallas import tpu as pltpu


def _round_up(x, m):
    return ((x + m - 1) // m) * m


def _vmem_capacity_bytes():
    """Physical VMEM per TensorCore (64 MiB on v7x, 128 MiB on v5e/v6e)."""
    try:
        cap = getattr(pltpu.get_tpu_info(), "vmem_capacity_bytes", None)
        if cap:
            return int(cap)
    except Exception:
        pass
    return 64 * 1024 * 1024  # conservative default (v7x-sized)


def _const_spec(block_shape, index_map):
    """BlockSpec for grid-invariant operands: single buffer (no double-buffer)."""
    try:
        return pl.BlockSpec(block_shape, index_map, pipeline_mode=pl.Buffered(1))
    except Exception:  # older jax without pipeline_mode/Buffered
        return pl.BlockSpec(block_shape, index_map)


def _choose_batch_tile(B, tb_max=256, target_tiles=2):
    """Batch tile: multiple of 16 (sublane/packing friendly), capped at tb_max,
    aiming for >= target_tiles grid steps so the 'parallel' batch axis can
    shard across v7x's two TensorCores when B is large enough."""
    tb = _round_up(max(-(-B // target_tiles), 1), 16)
    return max(16, min(tb, tb_max))


def _pick_tk(Fp, tk_cap):
    """Largest multiple of 128 <= tk_cap that divides Fp (Fp is a mult. of 128)."""
    tk_cap = max(128, min(tk_cap, Fp))
    tk_cap = (tk_cap // 128) * 128
    for tk in range(tk_cap, 127, -128):
        if Fp % tk == 0:
            return tk
    return 128


def _mlp_head_kernel_resident(x_ref, w1_ref, b1_ref, w2_ref, b2_ref, out_ref):
    # grid = (batch tiles,).  w1/b1/w2/b2 are VMEM-resident (single-buffered).
    x = x_ref[...].astype(jnp.bfloat16)  # cast in-kernel: hides under MXU (VPU slot)
    h = jnp.dot(x, w1_ref[...], preferred_element_type=jnp.float32) + b1_ref[...]
    h = jnp.maximum(h, 0.0)
    o = jnp.dot(h.astype(w2_ref.dtype), w2_ref[...],
                preferred_element_type=jnp.float32) + b2_ref[...]
    out_ref[...] = o.astype(out_ref.dtype)


def _mlp_head_kernel_ktiled(x_ref, w1_ref, b1_ref, w2_ref, b2_ref, out_ref, acc_ref):
    # grid = (batch tiles, K tiles); K (feature contraction) is the last axis.
    k = pl.program_id(1)
    part = jnp.dot(x_ref[...].astype(jnp.bfloat16), w1_ref[...],
                   preferred_element_type=jnp.float32)

    @pl.when(k == 0)
    def _():
        acc_ref[...] = part            # no zero-fill + RMW on the first K step

    @pl.when(k > 0)
    def _():
        acc_ref[...] += part

    @pl.when(k == pl.num_programs(1) - 1)
    def _():
        h = jnp.maximum(acc_ref[...] + b1_ref[...], 0.0)
        o = jnp.dot(h.astype(w2_ref.dtype), w2_ref[...],
                    preferred_element_type=jnp.float32) + b2_ref[...]
        out_ref[...] = o.astype(out_ref.dtype)


def mlp_head_pallas(feats, w1_p, b1_p, w2_p, b2_p, num_classes, *, tb_max=256):
    """Fused Linear -> ReLU -> Linear head.

    feats : [B, F] any float dtype (cast to bf16 inside the kernel).
    w1_p  : [Fp, Hp] bf16, pre-padded ONCE (Fp/Hp multiples of 128).
    b1_p  : [1, Hp]  f32.
    w2_p  : [Hp, Cp] bf16.   b2_p: [1, Cp] f32.
    Returns [B, num_classes] f32 logits.
    """
    B, F = feats.shape
    Fp, Hp = w1_p.shape
    Cp = w2_p.shape[1]
    x_item = jnp.dtype(feats.dtype).itemsize
    out_item = 4  # f32 logits

    TB = _choose_batch_tile(B, tb_max=tb_max)
    Bp = _round_up(B, TB)
    nb = Bp // TB

    # Pad feats only when actually misaligned (batch rows; rarely the F dim).
    if (Bp, Fp) != (B, F):
        feats = jnp.zeros((Bp, Fp), feats.dtype).at[:B, :F].set(feats)

    # Per-generation VMEM budget: ~48 MiB of v7x's 64 MiB, ~100 MiB of 128 MiB.
    cap = _vmem_capacity_bytes()
    budget = max(min(int(cap * 0.8), cap - 16 * 1024 * 1024), 8 * 1024 * 1024)

    const_bytes = Hp * Cp * 2 + (Hp + Cp) * 4                 # w2 + biases (1 buffer)
    stream_bytes = 2 * TB * Fp * x_item + 2 * TB * Cp * out_item
    h_scratch = TB * Hp * 4                                   # f32 hidden/accumulator
    resident_w1_bytes = Fp * Hp * 2

    use_resident = (resident_w1_bytes + const_bytes + stream_bytes + h_scratch) <= budget

    if use_resident:
        # Single K step: w1 VMEM-resident, no scratch accumulator.
        grid = (nb,)
        in_specs = [
            pl.BlockSpec((TB, Fp), lambda i: (i, 0)),          # x: per batch tile
            _const_spec((Fp, Hp), lambda i: (0, 0)),           # w1 resident
            _const_spec((1, Hp), lambda i: (0, 0)),            # b1
            _const_spec((Hp, Cp), lambda i: (0, 0)),           # w2
            _const_spec((1, Cp), lambda i: (0, 0)),            # b2
        ]
        out_specs = pl.BlockSpec((TB, Cp), lambda i: (i, 0))
        scratch = []
        kernel = _mlp_head_kernel_resident
        dims = ("parallel",)
        working = resident_w1_bytes + const_bytes + stream_bytes + h_scratch
        w1_stream_bytes = resident_w1_bytes                    # read from HBM once
    else:
        # K-streaming fallback for very large F*H (e.g. VGG 25088x4096 head).
        per_tk = 2 * TB * x_item + 2 * Hp * 2                  # x + w1 tiles (2 buffers)
        fixed = const_bytes + h_scratch + 2 * TB * Cp * out_item
        tk_cap = max(128, (budget - fixed) // max(per_tk, 1))
        TK = _pick_tk(Fp, min(tk_cap, 4096))
        nk = Fp // TK
        grid = (nb, nk)
        in_specs = [
            pl.BlockSpec((TB, TK), lambda i, k: (i, k)),       # x: batch x K tile
            pl.BlockSpec((TK, Hp), lambda i, k: (k, 0)),       # w1: K-sliced stream
            _const_spec((1, Hp), lambda i, k: (0, 0)),
            _const_spec((Hp, Cp), lambda i, k: (0, 0)),
            _const_spec((1, Cp), lambda i, k: (0, 0)),
        ]
        out_specs = pl.BlockSpec((TB, Cp), lambda i, k: (i, 0))
        scratch = [pltpu.VMEM((TB, Hp), jnp.float32)]
        kernel = _mlp_head_kernel_ktiled
        dims = ("parallel", "arbitrary")
        working = fixed + per_tk * TK
        w1_stream_bytes = nb * Fp * Hp * 2                     # re-streamed per batch tile

    vmem_limit = int(min(cap, max(2 * working, 8 * 1024 * 1024)))

    flops = 2 * Bp * Fp * Hp + 2 * Bp * Hp * Cp
    bytes_accessed = (Bp * Fp * x_item + w1_stream_bytes
                      + Hp * Cp * 2 + (Hp + Cp) * 4 + Bp * Cp * out_item)

    out_p = pl.pallas_call(
        kernel,
        out_shape=jax.ShapeDtypeStruct((Bp, Cp), jnp.float32),
        grid=grid,
        in_specs=in_specs,
        out_specs=out_specs,
        scratch_shapes=scratch,
        compiler_params=pltpu.CompilerParams(
            dimension_semantics=dims, vmem_limit_bytes=vmem_limit),
        cost_estimate=pl.CostEstimate(
            flops=flops, transcendentals=0, bytes_accessed=bytes_accessed),
    )(feats, w1_p, b1_p, w2_p, b2_p)

    # Slice padding off before any downstream use (loss, argmax, ...).
    return out_p[:B, :num_classes]


class CustomModelPallas:
    """JAX/Pallas re-implementation of biospecml CustomModel's custom head.

    hidden_units != None path: Linear -> ReLU -> Linear as one fused Pallas
    kernel.  Weights are padded and cast to bf16 (MXU-native) ONCE here and
    reused on every forward; biases stay f32.
    """

    def __init__(self, num_features, num_classes, hidden_units, key):
        if hidden_units is None:
            # TODO(synk): hidden_units=None (single-Linear head) not implemented.
            raise NotImplementedError("hidden_units=None path not implemented")
        self.num_features = num_features
        self.num_classes = num_classes
        self.hidden_units = hidden_units

        F, H, C = num_features, hidden_units, num_classes
        Fp, Hp, Cp = _round_up(F, 128), _round_up(H, 128), _round_up(C, 128)

        k1, k2, k3, k4 = jax.random.split(key, 4)
        # Deterministic small-scale init (synthetic weights, not a checkpoint).
        w1 = jax.random.normal(k1, (F, H), jnp.float32) * 0.02
        b1 = jax.random.normal(k2, (1, H), jnp.float32) * 0.02
        w2 = jax.random.normal(k3, (H, C), jnp.float32) * 0.02
        b2 = jax.random.normal(k4, (1, C), jnp.float32) * 0.02

        # Pad + cast ONCE; these device arrays are reused on every call.
        self.w1_p = jnp.zeros((Fp, Hp), jnp.bfloat16).at[:F, :H].set(
            w1.astype(jnp.bfloat16))
        self.b1_p = jnp.zeros((1, Hp), jnp.float32).at[:, :H].set(b1)
        self.w2_p = jnp.zeros((Hp, Cp), jnp.bfloat16).at[:H, :C].set(
            w2.astype(jnp.bfloat16))
        self.b2_p = jnp.zeros((1, Cp), jnp.float32).at[:, :C].set(b2)

    def backbone(self, x_nchw):
        # TODO(synk): stand-in for the pretrained torchvision feature extractor
        # (vgg/inception/densenet); replaced by a flatten of the NCHW image.
        return x_nchw.reshape(x_nchw.shape[0], -1)  # [B, num_features]

    def __call__(self, x_nchw):
        feats = self.backbone(x_nchw)  # native dtype; bf16 cast happens in-kernel
        return mlp_head_pallas(feats, self.w1_p, self.b1_p, self.w2_p, self.b2_p,
                               self.num_classes)


if __name__ == "__main__":
    key = jax.random.PRNGKey(0)
    k_in, k_params = jax.random.split(key)

    # Small NCHW image consistent with the module's forward signature.
    B, Cimg, Himg, Wimg = 2, 3, 16, 16
    x = jax.random.normal(k_in, (B, Cimg, Himg, Wimg), jnp.float32)

    num_features = Cimg * Himg * Wimg        # 768 (from the stubbed backbone)
    hidden_units = 32
    num_classes = 10

    model = CustomModelPallas(num_features, num_classes, hidden_units, k_params)

    out = jax.block_until_ready(model(x))
    assert out.shape == (B, num_classes)

    # Pure-JAX reference with matching dtype semantics (bf16 operands, f32 accum).
    F, H, C = num_features, hidden_units, num_classes
    feats = x.reshape(B, -1)
    w1 = model.w1_p[:F, :H]
    b1 = model.b1_p[:, :H]
    w2 = model.w2_p[:H, :C]
    b2 = model.b2_p[:, :C]
    h_ref = jnp.maximum(
        jnp.dot(feats.astype(jnp.bfloat16), w1,
                preferred_element_type=jnp.float32) + b1, 0.0)
    ref = jnp.dot(h_ref.astype(jnp.bfloat16), w2,
                  preferred_element_type=jnp.float32) + b2
    assert jnp.allclose(out, ref, atol=2e-2, rtol=2e-2), (
        f"max abs err {jnp.max(jnp.abs(out - ref))}")

    print("KERNEL_OK")
</pallas_src>

<mosaic_0001>
module attributes {stable_mosaic.version = 11 : i64} {
  func.func @_mlp_head_kernel_resident(%arg0: i32, %arg1: memref<16x768xf32, #tpu.memory_space<vmem>>, %arg2: memref<768x128xbf16, #tpu.memory_space<vmem>>, %arg3: memref<1x128xf32, #tpu.memory_space<vmem>>, %arg4: memref<128x128xbf16, #tpu.memory_space<vmem>>, %arg5: memref<1x128xf32, #tpu.memory_space<vmem>>, %arg6: memref<16x128xf32, #tpu.memory_space<vmem>>) attributes {dimension_semantics = [#tpu.dimension_semantics<parallel>], iteration_bounds = array<i64: 1>, scalar_prefetch = 0 : i64, scratch_operands = 0 : i64, tpu.core_type = #tpu.core_type<tc>, window_params = [{transform_indices = @transform_0, window_bounds = array<i64: 16, 768>}, {pipeline_mode = #tpu.pipeline_mode<synchronous>, transform_indices = @transform_1, window_bounds = array<i64: 768, 128>}, {pipeline_mode = #tpu.pipeline_mode<synchronous>, transform_indices = @transform_2, window_bounds = array<i64: 1, 128>}, {pipeline_mode = #tpu.pipeline_mode<synchronous>, transform_indices = @transform_3, window_bounds = array<i64: 128, 128>}, {pipeline_mode = #tpu.pipeline_mode<synchronous>, transform_indices = @transform_4, window_bounds = array<i64: 1, 128>}, {transform_indices = @transform_5, window_bounds = array<i64: 16, 128>}]} {
    %c0 = arith.constant 0 : index
    %c0_0 = arith.constant 0 : index
    %0 = vector.load %arg1[%c0, %c0_0] : memref<16x768xf32, #tpu.memory_space<vmem>>, vector<16x768xf32>
    %1 = arith.truncf %0 : vector<16x768xf32> to vector<16x768xbf16>
    %c0_1 = arith.constant 0 : index
    %c0_2 = arith.constant 0 : index
    %2 = vector.load %arg2[%c0_1, %c0_2] : memref<768x128xbf16, #tpu.memory_space<vmem>>, vector<768x128xbf16>
    %cst = arith.constant dense<0.000000e+00> : vector<16x128xf32>
    %3 = tpu.matmul %1, %2, %cst {dimension_numbers = #tpu.dot_dimension_numbers<[1], [0], [0], [1], [0, 0, 1, 1], [], []>} : vector<16x768xbf16>, vector<768x128xbf16>, vector<16x128xf32> -> vector<16x128xf32>
    %c0_3 = arith.constant 0 : index
    %c0_4 = arith.constant 0 : index
    %4 = vector.load %arg3[%c0_3, %c0_4] : memref<1x128xf32, #tpu.memory_space<vmem>>, vector<1x128xf32>
    %5 = vector.broadcast %4 : vector<1x128xf32> to vector<16x128xf32>
    %6 = arith.addf %3, %5 : vector<16x128xf32>
    %cst_5 = arith.constant 0.000000e+00 : f32
    %7 = vector.broadcast %cst_5 : f32 to vector<16x128xf32>
    %8 = arith.maximumf %6, %7 : vector<16x128xf32>
    %9 = arith.truncf %8 : vector<16x128xf32> to vector<16x128xbf16>
    %c0_6 = arith.constant 0 : index
    %c0_7 = arith.constant 0 : index
    %10 = vector.load %arg4[%c0_6, %c0_7] : memref<128x128xbf16, #tpu.memory_space<vmem>>, vector<128x128xbf16>
    %cst_8 = arith.constant dense<0.000000e+00> : vector<16x128xf32>
    %11 = tpu.matmul %9, %10, %cst_8 {dimension_numbers = #tpu.dot_dimension_numbers<[1], [0], [0], [1], [0, 0, 1, 1], [], []>} : vector<16x128xbf16>, vector<128x128xbf16>, vector<16x128xf32> -> vector<16x128xf32>
    %c0_9 = arith.constant 0 : index
    %c0_10 = arith.constant 0 : index
    %12 = vector.load %arg5[%c0_9, %c0_10] : memref<1x128xf32, #tpu.memory_space<vmem>>, vector<1x128xf32>
    %13 = vector.broadcast %12 : vector<1x128xf32> to vector<16x128xf32>
    %14 = arith.addf %11, %13 : vector<16x128xf32>
    %c0_11 = arith.constant 0 : index
    %c0_12 = arith.constant 0 : index
    %15 = vector.load %arg6[%c0_11, %c0_12] : memref<16x128xf32, #tpu.memory_space<vmem>>, vector<16x128xf32>
    tpu.vector_store %arg6[%c0_11, %c0_12], %14 {strides = array<i32>} : memref<16x128xf32, #tpu.memory_space<vmem>>, vector<16x128xf32>,
    return
  }
  func.func @transform_0(%arg0: i32) -> (i32, i32) {
    %c0_i32 = arith.constant 0 : i32
    %c0_i32_0 = arith.constant 0 : i32
    return %arg0, %c0_i32 : i32, i32
  }
  func.func @transform_1(%arg0: i32) -> (i32, i32) {
    %c0_i32 = arith.constant 0 : i32
    %c0_i32_0 = arith.constant 0 : i32
    %c0_i32_1 = arith.constant 0 : i32
    return %c0_i32, %c0_i32_0 : i32, i32
  }
  func.func @transform_2(%arg0: i32) -> (i32, i32) {
    %c0_i32 = arith.constant 0 : i32
    %c0_i32_0 = arith.constant 0 : i32
    %c0_i32_1 = arith.constant 0 : i32
    return %c0_i32, %c0_i32_0 : i32, i32
  }
  func.func @transform_3(%arg0: i32) -> (i32, i32) {
    %c0_i32 = arith.constant 0 : i32
    %c0_i32_0 = arith.constant 0 : i32
    %c0_i32_1 = arith.constant 0 : i32
    return %c0_i32, %c0_i32_0 : i32, i32
  }
  func.func @transform_4(%arg0: i32) -> (i32, i32) {
    %c0_i32 = arith.constant 0 : i32
    %c0_i32_0 = arith.constant 0 : i32
    %c0_i32_1 = arith.constant 0 : i32
    return %c0_i32, %c0_i32_0 : i32, i32
  }
  func.func @transform_5(%arg0: i32) -> (i32, i32) {
    %c0_i32 = arith.constant 0 : i32
    %c0_i32_0 = arith.constant 0 : i32
    return %arg0, %c0_i32 : i32, i32
  }
}

</mosaic_0001>

<bundles_post_ra>
// kernel: tpu_custom_call.1
= control target key start
LH: loop header
LB: loop body
LE: loop exit
PB: predicated region body
PF: predicated region fallthrough
CT: control target
= control target key end

     0   :  { %10 = vsyncpa [#allocation3], 0  ;;  %s1117_s0 = inlined_call_operand.hbm [shape: f32[16,768], index: 0, kind: input, shape index: {}]   ;;  %s1118_s1 = inlined_call_operand.hbm [shape: bf16[768,128], index: 1, kind: input, shape index: {}]   ;;  %s1119_s2 = inlined_call_operand.vmem [shape: f32[1,128], index: 2, kind: input, shape index: {}]   ;;  %s1120_s3 = inlined_call_operand.hbm [shape: bf16[128,128], index: 3, kind: input, shape index: {}]   ;;  %s1121_s4 = inlined_call_operand.vmem [shape: f32[1,128], index: 4, kind: input, shape index: {}]   ;;  %s1122_s5 = inlined_call_operand.hbm [shape: f32[16,128], index: 5, kind: output, shape index: {}]  }
   0x1   :  { %11 = vsyncpa [#allocation6], 0  ;;  %s30_s20 = sshll.u32 %s1118_s1, 4  ;;  %s31_s20 = int_to_ptr.hbm [resolvable:$true] %s30_s20 }
   0x2   :  { %12 = vsyncpa [#allocation4], 0  ;;  %s1059_s21 = smov [#allocation5]   ;;  %s17_s25 = sshll.u32 %s1117_s0, 4  ;;  %s18_s25 = int_to_ptr.hbm [resolvable:$true] %s17_s25 }
   0x3   :  { %s32_s22 = sshll.u32 %s1059_s21, 4  ;;  %s1060_s26 = smov 64   ;;  %s33_s22 = int_to_ptr.vmem [resolvable:$true] %s32_s22 }
   0x4   :  { %s1061_s27 = smov 4   ;;  %s1062_s28 = smov [#allocation2]  }
   0x5   :  { %38 = dma.hbm_to_vmem [thread:$0]  %s31_s20, 6144, %s33_s22, [#allocation6], %s1060_s26, %s1060_s26, %s1061_s27  }
   0x6   :  { %s19_s29 = sshll.u32 %s1062_s28, 4  ;;  %s1063_s30 = smov 768   ;;  %s20_s29 = int_to_ptr.vmem [resolvable:$true] %s19_s29 }
   0x7   :  { %s1064_s6 = smov 48   ;;  %s45_s8 = sshll.u32 %s1120_s3, 4  ;;  %s46_s8 = int_to_ptr.hbm [resolvable:$true] %s45_s8 }
   0x8   :  { %25 = dma.hbm_to_vmem [thread:$0]  %s18_s25, 1536, %s20_s29, [#allocation3], %s1063_s30, %s1063_s30, %s1064_s6  }
   0x9   :  { %s1065_s9 = smov [#allocation7]  }
   0xa   :  { %s47_s10 = sshll.u32 %s1065_s9, 4  ;;  %s48_s10 = int_to_ptr.vmem [resolvable:$true] %s47_s10 }
   0xb   :  { %53 = dma.hbm_to_vmem [thread:$0]  %s46_s8, 1024, %s48_s10, [#allocation6], %s1060_s26, %s1060_s26, %s1061_s27  }
   0xc   :  { %1053 = dma.done.wait [#allocation3], 1536  }
   0xd   :  { %1054 = vsyncadd [#allocation3], 4294965760 }
   0xe   :  { %1055 = dma.done.wait [#allocation6], 7168  }
   0xf   :  { %1056 = vsyncadd [#allocation6], 4294960128  ;;  %v896_v0 = vld [vmem:[#allocation5 + $0x38] sm:$0xff]  ;;  %v895_v4 = vld [vmem:[#allocation5 + $0x30] sm:$0xff]  ;;  %s1066_s12 = smov [#allocation8]   ;;  %s651_s16 = sshll.u32 %s1122_s5, 4  ;;  %s652_s16 = int_to_ptr.hbm [resolvable:$true] %s651_s16 }
  0x10   :  { %v904_v1 = vld [vmem:[#allocation5 + $0x78] sm:$0xff]  ;;  %474 = vmatpush.bf16.msra.mxu0 %v896_v0  ;;  %v903_v5 = vld [vmem:[#allocation5 + $0x70] sm:$0xff]  ;;  %v894_v8 = vld [vmem:[#allocation5 + $0x28] sm:$0xff]  ;;  %s649_s13 = sshll.u32 %s1066_s12, 4  ;;  %s1067_s17 = smov 128   ;;  %s650_s13 = int_to_ptr.vmem [resolvable:$true] %s649_s13 }
  0x11   :  { %v912_v2 = vld [vmem:[#allocation5 + $0xb8] sm:$0xff]  ;;  %488 = vmatpush.bf16.msra.mxu1 %v904_v1  ;;  %v911_v6 = vld [vmem:[#allocation5 + $0xb0] sm:$0xff]  ;;  %v902_v9 = vld [vmem:[#allocation5 + $0x68] sm:$0xff]  ;;  %s1068_s18 = smov 8  }
  0x12   :  { %v920_v3 = vld [vmem:[#allocation5 + $0xf8] sm:$0xff]  ;;  %502 = vmatpush.bf16.msra.mxu2 %v912_v2  ;;  %v919_v7 = vld [vmem:[#allocation5 + $0xf0] sm:$0xff]  ;;  %v910_v10 = vld [vmem:[#allocation5 + $0xa8] sm:$0xff] }
  0x13   :  { %516 = vmatpush.bf16.msra.mxu3 %v920_v3  ;;  %v918_v11 = vld [vmem:[#allocation5 + $0xe8] sm:$0xff]  ;;  %v893_v12 = vld [vmem:[#allocation5 + $0x20] sm:$0xff]  ;;  %v892_v16 = vld [vmem:[#allocation5 + $0x18] sm:$0xff] }
  0x14   :  { %475 = vmatpush.bf16.msra.mxu0 %v895_v4  ;;  %v901_v13 = vld [vmem:[#allocation5 + $0x60] sm:$0xff]  ;;  %v900_v17 = vld [vmem:[#allocation5 + $0x58] sm:$0xff]  ;;  %v891_v20 = vld [vmem:[#allocation5 + $0x10] sm:$0xff] }
  0x15   :  { %489 = vmatpush.bf16.msra.mxu1 %v903_v5  ;;  %v909_v14 = vld [vmem:[#allocation5 + $0xa0] sm:$0xff]  ;;  %v908_v18 = vld [vmem:[#allocation5 + $0x98] sm:$0xff]  ;;  %v899_v21 = vld [vmem:[#allocation5 + $0x50] sm:$0xff] }
  0x16   :  { %503 = vmatpush.bf16.msra.mxu2 %v911_v6  ;;  %v917_v15 = vld [vmem:[#allocation5 + $0xe0] sm:$0xff]  ;;  %v916_v19 = vld [vmem:[#allocation5 + $0xd8] sm:$0xff]  ;;  %v907_v22 = vld [vmem:[#allocation5 + $0x90] sm:$0xff] }
  0x17   :  { %517 = vmatpush.bf16.msra.mxu3 %v919_v7  ;;  %v915_v23 = vld [vmem:[#allocation5 + $0xd0] sm:$0xff]  ;;  %v890_v24 = vld [vmem:[#allocation5 + $0x8] sm:$0xff]  ;;  %v889_v28 = vld [vmem:[#allocation5] sm:$0xff] }
  0x18   :  { %476 = vmatpush.bf16.msra.mxu0 %v894_v8  ;;  %v898_v25 = vld [vmem:[#allocation5 + $0x48] sm:$0xff]  ;;  %v897_v29 = vld [vmem:[#allocation5 + $0x40] sm:$0xff]  ;;  %v74_v31 = vld [vmem:[#allocation2 + $0x30] sm:$0xff] }
  0x19   :  { %490 = vmatpush.bf16.msra.mxu1 %v902_v9  ;;  %v906_v26 = vld [vmem:[#allocation5 + $0x88] sm:$0xff]  ;;  %v68_v30 = vld [vmem:[#allocation2] sm:$0xff]  ;;  %v75_v33 = vld [vmem:[#allocation2 + $0x38] sm:$0xff] }
  0x1a   :  { %504 = vmatpush.bf16.msra.mxu2 %v910_v10  ;;  %v914_v27 = vld [vmem:[#allocation5 + $0xc8] sm:$0xff]  ;;  %v928_v34 = vld [vmem:[#allocation5 + $0x138] sm:$0xff]  ;;  %v905_v36 = vld [vmem:[#allocation5 + $0x80] sm:$0xff]  ;;  %v80_v40 = vpack.c.bf16 %v74_v31, %v68_v30 }
  0x1b   :  { %518 = vmatpush.bf16.msra.mxu3 %v918_v11  ;;  %v69_v32 = vld [vmem:[#allocation2 + $0x8] sm:$0xff]  ;;  %v936_v35 = vld [vmem:[#allocation5 + $0x178] sm:$0xff]  ;;  %v913_v37 = vld [vmem:[#allocation5 + $0xc0] sm:$0xff] }
  0x1c   :  { %477 = vmatpush.bf16.msra.mxu0 %v893_v12  ;;  %v70_v38 = vld [vmem:[#allocation2 + $0x10] sm:$0xff]  ;;  %v76_v39 = vld [vmem:[#allocation2 + $0x40] sm:$0xff]  ;;  %v71_v41 = vld [vmem:[#allocation2 + $0x18] sm:$0xff]  ;;  %v81_v43 = vpack.c.bf16 %v75_v33, %v69_v32 }
  0x1d   :  { %491 = vmatpush.bf16.msra.mxu1 %v901_v13  ;;  %v77_v42 = vld [vmem:[#allocation2 + $0x48] sm:$0xff]  ;;  %v927_v44 = vld [vmem:[#allocation5 + $0x130] sm:$0xff]  ;;  %v82_v46 = vpack.c.bf16 %v76_v39, %v70_v38  ;;  %v925_v50 = vld [vmem:[#allocation5 + $0x120] sm:$0xff] }
  0x1e   :  { %505 = vmatpush.bf16.msra.mxu2 %v909_v14  ;;  %v935_v45 = vld [vmem:[#allocation5 + $0x170] sm:$0xff]  ;;  %v83_v47 = vpack.c.bf16 %v77_v42, %v71_v41  ;;  %v926_v48 = vld [vmem:[#allocation5 + $0x128] sm:$0xff]  ;;  %v933_v51 = vld [vmem:[#allocation5 + $0x160] sm:$0xff] }
  0x1f   :  { %519 = vmatpush.bf16.msra.mxu3 %v917_v15  ;;  %v934_v49 = vld [vmem:[#allocation5 + $0x168] sm:$0xff]  ;;  %v924_v52 = vld [vmem:[#allocation5 + $0x118] sm:$0xff]  ;;  %v923_v54 = vld [vmem:[#allocation5 + $0x110] sm:$0xff] }
  0x20   :  { %478 = vmatpush.bf16.msra.mxu0 %v892_v16  ;;  %v932_v53 = vld [vmem:[#allocation5 + $0x158] sm:$0xff]  ;;  %v931_v55 = vld [vmem:[#allocation5 + $0x150] sm:$0xff]  ;;  %v922_v56 = vld [vmem:[#allocation5 + $0x108] sm:$0xff] }
  0x21   :  { %492 = vmatpush.bf16.msra.mxu1 %v900_v17  ;;  %v930_v57 = vld [vmem:[#allocation5 + $0x148] sm:$0xff]  ;;  %v921_v58 = vld [vmem:[#allocation5 + $0x100] sm:$0xff]  ;;  %v78_v61 = vld [vmem:[#allocation2 + $0x50] sm:$0xff] }
  0x22   :  { %506 = vmatpush.bf16.msra.mxu2 %v908_v18  ;;  %v929_v59 = vld [vmem:[#allocation5 + $0x140] sm:$0xff]  ;;  %v73_v62 = vld [vmem:[#allocation2 + $0x28] sm:$0xff]  ;;  %v79_v63 = vld [vmem:[#allocation2 + $0x58] sm:$0xff] }
  0x23   :  { %520 = vmatpush.bf16.msra.mxu3 %v916_v19  ;;  %v72_v60 = vld [vmem:[#allocation2 + $0x20] sm:$0xff]  ;;  %v85_v1 = vpack.c.bf16 %v79_v63, %v73_v62  ;;  %v944_v2 = vld [vmem:[#allocation7 + $0x38] sm:$0xff]  ;;  %v943_v3 = vld [vmem:[#allocation7 + $0x30] sm:$0xff] }
  0x24   :  { %479 = vmatpush.bf16.msra.mxu0 %v891_v20  ;;  %v84_v0 = vpack.c.bf16 %v78_v61, %v72_v60  ;;  %v942_v4 = vld [vmem:[#allocation7 + $0x28] sm:$0xff]  ;;  %v941_v5 = vld [vmem:[#allocation7 + $0x20] sm:$0xff]  ;;  %v940_v6 = vld [vmem:[#allocation7 + $0x18] sm:$0xff] }
  0x25   :  { %493 = vmatpush.bf16.msra.mxu1 %v899_v21  ;;  %v939_v7 = vld [vmem:[#allocation7 + $0x10] sm:$0xff]  ;;  %v938_v8 = vld [vmem:[#allocation7 + $0x8] sm:$0xff]  ;;  %v937_v9 = vld [vmem:[#allocation7] sm:$0xff] }
  0x26   :  { %507 = vmatpush.bf16.msra.mxu2 %v907_v22  ;;  %v955_v12 = vld [vmem:[%s1119_s2] ss:$0 sm:$0xff] }
  0x27   :  { %521 = vmatpush.bf16.msra.mxu3 %v915_v23  ;;  %v956_v38 = vld [vmem:[%s1121_s4] ss:$0 sm:$0xff] }
  0x28   :  { %480 = vmatpush.bf16.msra.mxu0 %v890_v24 }
  0x29   :  { %494 = vmatpush.bf16.msra.mxu1 %v898_v25 }
  0x2a   :  { %508 = vmatpush.bf16.msra.mxu2 %v906_v26 }
  0x2b   :  { %522 = vmatpush.bf16.msra.mxu3 %v914_v27 }
  0x2c   :  { %481 = vmatpush.bf16.msra.mxu0 %v889_v28 }
  0x2d   :  { %495 = vmatpush.bf16.msra.mxu1 %v897_v29 }
  0x2e   :  { %509 = vmatpush.bf16.msra.mxu2 %v905_v36 }
  0x2f   :  { %523 = vmatpush.bf16.msra.mxu3 %v913_v37  ;;  %482 = vmatmul.bf16.vlgmr.msra.gmra.mxu0 %v80_v40 }
  0x30   :  { %530 = vmatpush.bf16.msrb.mxu0 %v928_v34  ;;  %496 = vmatmul.bf16.vlgmr.msra.gmra.mxu1 %v81_v43 }
  0x31   :  { %544 = vmatpush.bf16.msrb.mxu1 %v936_v35  ;;  %510 = vmatmul.bf16.vlgmr.msra.gmra.mxu2 %v82_v46 }
  0x32   :  { %524 = vmatmul.bf16.vlgmr.msra.gmra.mxu3 %v83_v47  ;;  %629 = vmatpush.bf16.msrb.mxu2 %v944_v2 }
  0x34   :  { %531 = vmatpush.bf16.msrb.mxu0 %v927_v44 }
  0x35   :  { %545 = vmatpush.bf16.msrb.mxu1 %v935_v45 }
  0x36   :  { %630 = vmatpush.bf16.msrb.mxu2 %v943_v3 }
  0x38   :  { %532 = vmatpush.bf16.msrb.mxu0 %v926_v48 }
  0x39   :  { %546 = vmatpush.bf16.msrb.mxu1 %v934_v49 }
  0x3a   :  { %631 = vmatpush.bf16.msrb.mxu2 %v942_v4 }
  0x3c   :  { %533 = vmatpush.bf16.msrb.mxu0 %v925_v50 }
  0x3d   :  { %547 = vmatpush.bf16.msrb.mxu1 %v933_v51 }
  0x3e   :  { %632 = vmatpush.bf16.msrb.mxu2 %v941_v5 }
  0x40   :  { %534 = vmatpush.bf16.msrb.mxu0 %v924_v52 }
  0x41   :  { %548 = vmatpush.bf16.msrb.mxu1 %v932_v53 }
  0x42   :  { %633 = vmatpush.bf16.msrb.mxu2 %v940_v6 }
  0x44   :  { %535 = vmatpush.bf16.msrb.mxu0 %v923_v54 }
  0x45   :  { %549 = vmatpush.bf16.msrb.mxu1 %v931_v55 }
  0x46   :  { %634 = vmatpush.bf16.msrb.mxu2 %v939_v7 }
  0x48   :  { %536 = vmatpush.bf16.msrb.mxu0 %v922_v56 }
  0x49   :  { %550 = vmatpush.bf16.msrb.mxu1 %v930_v57 }
  0x4a   :  { %635 = vmatpush.bf16.msrb.mxu2 %v938_v8 }
  0x4c   :  { %537 = vmatpush.bf16.msrb.mxu0 %v921_v58 }
  0x4d   :  { %551 = vmatpush.bf16.msrb.mxu1 %v929_v59 }
  0x4e   :  { %636 = vmatpush.bf16.msrb.mxu2 %v937_v9 }
  0x4f   :  { %538 = vmatmul.bf16.vlgmr.msrb.gmra.mxu0 %v84_v0 }
  0x50   :  { %552 = vmatmul.bf16.vlgmr.msrb.gmra.mxu1 %v85_v1 }
  0xac   :  { %v483_v10 = vpop.f32.mrf.mxu0 }
  0xad   :  { %v497_v11 = vpop.f32.mrf.mxu1  ;;  %v484_v14 = vadd.f32 %v955_v12, %v483_v10 }
  0xaf   :  { %v498_v18 = vadd.f32 %v497_v11, %v484_v14 }
  0xb4   :  { %v511_v13 = vpop.f32.mrf.mxu2  ;;  %v485_v15 = vpop.f32.mrf.mxu0 }
  0xb5   :  { %v499_v16 = vpop.f32.mrf.mxu1  ;;  %v525_v17 = vpop.f32.mrf.mxu3  ;;  %v486_v19 = vadd.f32 %v955_v12, %v485_v15  ;;  %v512_v20 = vadd.f32 %v511_v13, %v498_v18 }
  0xb7   :  { %v500_v21 = vadd.f32 %v499_v16, %v486_v19  ;;  %v526_v25 = vadd.f32 %v525_v17, %v512_v20 }
  0xbc   :  { %v513_v22 = vpop.f32.mrf.mxu2 }
  0xbd   :  { %v514_v26 = vadd.f32 %v513_v22, %v500_v21  ;;  %v527_v27 = vpop.f32.mrf.mxu3 }
  0xbf   :  { %v528_v29 = vadd.f32 %v527_v27, %v514_v26 }
  0xcc   :  { %v539_v23 = vpop.f32.mrf.mxu0 }
  0xcd   :  { %v553_v24 = vpop.f32.mrf.mxu1  ;;  %v540_v28 = vadd.f32 %v539_v23, %v526_v25 }
  0xcf   :  { %v554_v31 = vadd.f32 %v553_v24, %v540_v28 }
  0xd1   :  { %v558_v35 = vmax.f32 %v554_v31, 0.0 }
  0xd4   :  { %v541_v30 = vpop.f32.mrf.mxu0 }
  0xd5   :  { %v542_v32 = vadd.f32 %v541_v30, %v528_v29  ;;  %v555_v33 = vpop.f32.mrf.mxu1 }
  0xd7   :  { %v556_v34 = vadd.f32 %v555_v33, %v542_v32 }
  0xd9   :  { %v559_v36 = vmax.f32 %v556_v34, 0.0 }
  0xdb   :  { %v560_v37 = vpack.c.bf16 %v559_v36, %v558_v35 }
  0xdd   :  { %637 = vmatmul.bf16.vlgmr.msrb.gmra.mxu2 %v560_v37 }
 0x160   :  { %v638_v39 = vpop.f32.mrf.mxu2 }
 0x161   :  { %v639_v40 = vadd.f32 %v956_v38, %v638_v39 }
 0x163   :  { %643 = vst [vmem:[#allocation8] sm:$0xff] %v639_v40 }
 0x168   :  { %v640_v41 = vpop.f32.mrf.mxu2 }
 0x169   :  { %v641_v42 = vadd.f32 %v956_v38, %v640_v41 }
 0x16b   :  { %644 = vst [vmem:[#allocation8 + $0x8] sm:$0xff] %v641_v42 }
 0x16c   :  { %657 = dma.vmem_to_hbm [thread:$0]  %s650_s13, 256, %s652_s16, [#allocation4], %s1067_s17, %s1067_s17, %s1068_s18  }
 0x16d   :  { %1057 = dma.done.wait [#allocation4], 256  }
 0x16e   :  { %1058 = vsyncadd [#allocation4], 4294967040 }
 0x16f   :  { %662 = vsyncpa [#allocation3], 1 }
 0x170   :  { %663 = vsyncpa [#allocation6], 1 }
 0x171   :  { %664 = vsyncpa [#allocation4], 1 }

</bundles_post_ra>
